<compile_context>
chip_gen: v7x
topology: tpu7x:2x2x1
jax: 0.10.0
libtpu: 0.0.40
codegen_flags: <defaults>
</compile_context>

<pallas_src>
import jax
import jax.numpy as jnp
from jax import lax
from jax.experimental import pallas as pl
from jax.experimental.pallas import tpu as pltpu

LANE = 128     # lane width (last-dim tiling unit)
CHUNK = 512    # lanes per inner-loop iteration (keeps per-chunk intermediates in vregs)


def mlp_kernel(x_ref, w1_ref, b1_ref, w2_ref, b2_ref, w3_ref, b3_ref, o_ref):
    tile_n = o_ref.shape[-1]
    chunk = min(CHUNK, tile_n)
    n_chunks = tile_n // chunk          # wrapper guarantees exact division

    # Tiny resident weights/biases: load once, keep out of the chunk loop.
    w1 = w1_ref[...]                    # (16, 3)  bf16
    b1 = b1_ref[...]                    # (16, 1)  f32
    w2 = w2_ref[...]                    # (32, 16) bf16
    b2 = b2_ref[...]                    # (32, 1)  f32
    w3 = w3_ref[...]                    # (32, 1)  f32
    b3 = b3_ref[...]                    # (1, 1)   f32

    def body(c, carry):
        off = pl.multiple_of(c * chunk, chunk)
        x = x_ref[:, pl.ds(off, chunk)].astype(jnp.bfloat16)           # (3, C)
        # fc1 + relu  (MXU, bf16 operands, f32 accumulation)
        h1 = jnp.dot(w1, x, preferred_element_type=jnp.float32)        # (16, C)
        h1 = jnp.maximum(h1 + b1, 0.0)
        # fc2 + relu  (MXU)
        h2 = jnp.dot(w2, h1.astype(jnp.bfloat16),
                     preferred_element_type=jnp.float32)               # (32, C)
        h2 = jnp.maximum(h2 + b2, 0.0)
        # fc3 (out=1): VPU broadcast-mul + XLU sublane reduce — skip the near-empty MXU push.
        # (If bundle dumps show the vext slot binding, move fc1 to the VPU instead.)
        z = jnp.sum(w3 * h2, axis=0, keepdims=True) + b3               # (1, C)
        # sigmoid: EUP exp + EUP approx reciprocal keeps the VALU/store path clear.
        e = jnp.exp(-z)
        o_ref[:, pl.ds(off, chunk)] = pl.reciprocal(1.0 + e, approx=True).astype(o_ref.dtype)
        return carry

    lax.fori_loop(0, n_chunks, body, 0, unroll=True)


def _pick_tile(n, tile_n):
    """Lane-dense tile: multiple of the inner chunk; prefer >=2 balanced grid steps when the
    batch allows it (v7x has 2 TensorCores; harmless on 1-TC v5e/v6e)."""
    tile_n = max(LANE, (min(int(tile_n), pl.cdiv(n, LANE) * LANE) // LANE) * LANE)
    chunk = min(CHUNK, tile_n)
    tile_n = (tile_n // chunk) * chunk
    if pl.cdiv(n, tile_n) <= 2 and tile_n > chunk:
        tile_n = max(chunk, pl.cdiv(pl.cdiv(n, chunk), 2) * chunk)
    return tile_n


def _prep_params(params):
    """Feature-major operands; bf16 only for the MXU weights (accumulation stays f32)."""
    return (
        params["W1"].T.astype(jnp.bfloat16),   # (16, 3)
        params["b1"].T,                        # (16, 1)
        params["W2"].T.astype(jnp.bfloat16),   # (32, 16)
        params["b2"].T,                        # (32, 1)
        params["W3"],                          # (32, 1)  column for the VPU reduce
        params["b3"],                          # (1, 1)
    )


def neural_net_forward_fm(x_fm, params, *, tile_n=16384):
    """Preferred entry point: x_fm is feature-major (3, N) float32. Returns (N, 1) float32.
    No wrapper transpose/pad passes; the partial last grid block is masked on writeback."""
    f, n = x_fm.shape
    assert f == 3
    tile_n = _pick_tile(n, tile_n)
    w1, b1, w2, b2, w3, b3 = _prep_params(params)
    const = lambda a: pl.BlockSpec(a.shape, lambda i: (0, 0))   # VMEM-resident after step 0

    out = pl.pallas_call(
        mlp_kernel,
        out_shape=jax.ShapeDtypeStruct((1, n), jnp.float32),
        grid_spec=pltpu.PrefetchScalarGridSpec(
            num_scalar_prefetch=0,
            grid=(pl.cdiv(n, tile_n),),
            in_specs=[
                pl.BlockSpec((3, tile_n), lambda i: (0, i)),    # x tile, batch on lanes
                const(w1), const(b1),
                const(w2), const(b2),
                const(w3), const(b3),
            ],
            out_specs=pl.BlockSpec((1, tile_n), lambda i: (0, i)),   # lane-dense output
        ),
        compiler_params=pltpu.CompilerParams(
            dimension_semantics=("parallel",),      # shard batch steps across TCs on v7x
            vmem_limit_bytes=32 * 1024 * 1024,      # explicit; valid on v5e/v6e/v7x
        ),
    )(x_fm, w1, b1, w2, b2, w3, b3)
    return out.reshape(n, 1)                        # (1,N)->(N,1) is a free reshape


def neural_net_forward(x, params, *, tile_n=16384):
    """PyTorch-interface wrapper: x is (N, 3). Costs one extra HBM transpose pass;
    prefer neural_net_forward_fm with feature-major inputs for large N."""
    n, f = x.shape
    assert f == 3
    return neural_net_forward_fm(x.T, params, tile_n=tile_n)


def init_params(key):
    """Deterministic init matching nn.Linear shapes; weights stored as (in, out)."""
    ks = jax.random.split(key, 6)

    def linear(kw, kb, fan_in, fan_out):
        bound = 1.0 / jnp.sqrt(float(fan_in))
        w = jax.random.uniform(kw, (fan_in, fan_out), jnp.float32, -bound, bound)
        b = jax.random.uniform(kb, (1, fan_out), jnp.float32, -bound, bound)
        return w, b

    W1, b1 = linear(ks[0], ks[1], 3, 16)
    W2, b2 = linear(ks[2], ks[3], 16, 32)
    W3, b3 = linear(ks[4], ks[5], 32, 1)
    return dict(W1=W1, b1=b1, W2=W2, b2=b2, W3=W3, b3=b3)


def reference_forward(x, p):
    h1 = jnp.maximum(x @ p["W1"] + p["b1"], 0.0)
    h2 = jnp.maximum(h1 @ p["W2"] + p["b2"], 0.0)
    return jax.nn.sigmoid(h2 @ p["W3"] + p["b3"])


if __name__ == "__main__":
    key = jax.random.PRNGKey(0)
    k_x, k_p, k_x2, k_x3 = jax.random.split(key, 4)
    params = init_params(k_p)

    # Tolerance: bf16 MXU operands (~0.4% rel) + EUP approx reciprocal (~1e-3) on a
    # sigmoid probability — comfortably within 5e-3 absolute.
    tol = dict(atol=5e-3, rtol=5e-3)

    # Small case (batch=8) through the (N, 3) PyTorch-interface wrapper.
    x = jax.random.normal(k_x, (8, 3), dtype=jnp.float32)
    out = jax.block_until_ready(neural_net_forward(x, params))
    ref = reference_forward(x, params)
    assert out.shape == (8, 1)
    assert jnp.allclose(out, ref, **tol), "mismatch vs reference (N=8)"

    # Feature-major path: multi-step grid + masked partial last block (N=300, tile_n=128).
    x2 = jax.random.normal(k_x2, (3, 300), dtype=jnp.float32)
    out2 = jax.block_until_ready(neural_net_forward_fm(x2, params, tile_n=128))
    ref2 = reference_forward(x2.T, params)
    assert out2.shape == (300, 1)
    assert jnp.allclose(out2, ref2, **tol), "mismatch vs reference (N=300)"

    # Feature-major path exercising the in-kernel chunk loop and >=2-step tile balancing.
    x3 = jax.random.normal(k_x3, (3, 1500), dtype=jnp.float32)
    out3 = jax.block_until_ready(neural_net_forward_fm(x3, params))
    ref3 = reference_forward(x3.T, params)
    assert out3.shape == (1500, 1)
    assert jnp.allclose(out3, ref3, **tol), "mismatch vs reference (N=1500)"

    print("KERNEL_OK")
</pallas_src>

<mosaic_0001>
module attributes {stable_mosaic.version = 11 : i64} {
  func.func @mlp_kernel(%arg0: i32, %arg1: memref<3x128xf32, #tpu.memory_space<vmem>>, %arg2: memref<16x3xbf16, #tpu.memory_space<vmem>>, %arg3: memref<16x1xf32, #tpu.memory_space<vmem>>, %arg4: memref<32x16xbf16, #tpu.memory_space<vmem>>, %arg5: memref<32x1xf32, #tpu.memory_space<vmem>>, %arg6: memref<32x1xf32, #tpu.memory_space<vmem>>, %arg7: memref<1x1xf32, #tpu.memory_space<vmem>>, %arg8: memref<1x128xf32, #tpu.memory_space<vmem>>) attributes {dimension_semantics = [#tpu.dimension_semantics<parallel>], iteration_bounds = array<i64: 1>, scalar_prefetch = 0 : i64, scratch_operands = 0 : i64, tpu.core_type = #tpu.core_type<tc>, window_params = [{transform_indices = @transform_0, window_bounds = array<i64: 3, 128>}, {pipeline_mode = #tpu.pipeline_mode<synchronous>, transform_indices = @transform_1, window_bounds = array<i64: 16, 3>}, {pipeline_mode = #tpu.pipeline_mode<synchronous>, transform_indices = @transform_2, window_bounds = array<i64: 16, 1>}, {pipeline_mode = #tpu.pipeline_mode<synchronous>, transform_indices = @transform_3, window_bounds = array<i64: 32, 16>}, {pipeline_mode = #tpu.pipeline_mode<synchronous>, transform_indices = @transform_4, window_bounds = array<i64: 32, 1>}, {pipeline_mode = #tpu.pipeline_mode<synchronous>, transform_indices = @transform_5, window_bounds = array<i64: 32, 1>}, {pipeline_mode = #tpu.pipeline_mode<synchronous>, transform_indices = @transform_6, window_bounds = array<i64: 1, 1>}, {transform_indices = @transform_7, window_bounds = array<i64: 1, 128>}]} {
    %c0 = arith.constant 0 : index
    %c0_0 = arith.constant 0 : index
    %0 = vector.load %arg2[%c0, %c0_0] : memref<16x3xbf16, #tpu.memory_space<vmem>>, vector<16x3xbf16>
    %c0_1 = arith.constant 0 : index
    %c0_2 = arith.constant 0 : index
    %1 = vector.load %arg3[%c0_1, %c0_2] : memref<16x1xf32, #tpu.memory_space<vmem>>, vector<16x1xf32>
    %c0_3 = arith.constant 0 : index
    %c0_4 = arith.constant 0 : index
    %2 = vector.load %arg4[%c0_3, %c0_4] : memref<32x16xbf16, #tpu.memory_space<vmem>>, vector<32x16xbf16>
    %c0_5 = arith.constant 0 : index
    %c0_6 = arith.constant 0 : index
    %3 = vector.load %arg5[%c0_5, %c0_6] : memref<32x1xf32, #tpu.memory_space<vmem>>, vector<32x1xf32>
    %c0_7 = arith.constant 0 : index
    %c0_8 = arith.constant 0 : index
    %4 = vector.load %arg6[%c0_7, %c0_8] : memref<32x1xf32, #tpu.memory_space<vmem>>, vector<32x1xf32>
    %c0_9 = arith.constant 0 : index
    %c0_10 = arith.constant 0 : index
    %5 = vector.load %arg7[%c0_9, %c0_10] : memref<1x1xf32, #tpu.memory_space<vmem>>, vector<1x1xf32>
    %c0_i32 = arith.constant 0 : i32
    %c128_i32 = arith.constant 128 : i32
    %6 = arith.muli %c0_i32, %c128_i32 : i32
    %7 = tpu.assume_multiple %6, 128 : i32
    %c0_11 = arith.constant 0 : index
    %8 = arith.index_cast %7 : i32 to index
    %9 = vector.load %arg1[%c0_11, %8] : memref<3x128xf32, #tpu.memory_space<vmem>>, vector<3x128xf32>
    %10 = arith.truncf %9 : vector<3x128xf32> to vector<3x128xbf16>
    %cst = arith.constant dense<0.000000e+00> : vector<16x128xf32>
    %11 = tpu.matmul %0, %10, %cst {dimension_numbers = #tpu.dot_dimension_numbers<[1], [0], [0], [1], [0, 0, 1, 1], [], []>} : vector<16x3xbf16>, vector<3x128xbf16>, vector<16x128xf32> -> vector<16x128xf32>
    %12 = vector.broadcast %1 : vector<16x1xf32> to vector<16x128xf32>
    %13 = arith.addf %11, %12 : vector<16x128xf32>
    %cst_12 = arith.constant 0.000000e+00 : f32
    %14 = vector.broadcast %cst_12 : f32 to vector<16x128xf32>
    %15 = arith.maximumf %13, %14 : vector<16x128xf32>
    %16 = arith.truncf %15 : vector<16x128xf32> to vector<16x128xbf16>
    %cst_13 = arith.constant dense<0.000000e+00> : vector<32x128xf32>
    %17 = tpu.matmul %2, %16, %cst_13 {dimension_numbers = #tpu.dot_dimension_numbers<[1], [0], [0], [1], [0, 0, 1, 1], [], []>} : vector<32x16xbf16>, vector<16x128xbf16>, vector<32x128xf32> -> vector<32x128xf32>
    %18 = vector.broadcast %3 : vector<32x1xf32> to vector<32x128xf32>
    %19 = arith.addf %17, %18 : vector<32x128xf32>
    %cst_14 = arith.constant 0.000000e+00 : f32
    %20 = vector.broadcast %cst_14 : f32 to vector<32x128xf32>
    %21 = arith.maximumf %19, %20 : vector<32x128xf32>
    %22 = vector.broadcast %4 : vector<32x1xf32> to vector<32x128xf32>
    %23 = arith.mulf %22, %21 : vector<32x128xf32>
    %cst_15 = arith.constant dense<0.000000e+00> : vector<128xf32>
    %24 = vector.multi_reduction <add>, %23, %cst_15 [0] : vector<32x128xf32> to vector<128xf32>
    %25 = vector.shape_cast %24 : vector<128xf32> to vector<1x128xf32>
    %26 = vector.broadcast %5 : vector<1x1xf32> to vector<1x128xf32>
    %27 = arith.addf %25, %26 : vector<1x128xf32>
    %cst_16 = arith.constant 0.000000e+00 : f32
    %28 = vector.broadcast %cst_16 : f32 to vector<1x128xf32>
    %29 = arith.subf %28, %27 : vector<1x128xf32>
    %30 = math.exp %29 : vector<1x128xf32>
    %cst_17 = arith.constant 1.000000e+00 : f32
    %31 = vector.broadcast %cst_17 : f32 to vector<1x128xf32>
    %32 = arith.addf %31, %30 : vector<1x128xf32>
    %33 = tpu.reciprocal %32 {approx = true} : vector<1x128xf32> -> vector<1x128xf32>
    %c0_18 = arith.constant 0 : index
    %34 = arith.index_cast %7 : i32 to index
    %35 = vector.load %arg8[%c0_18, %34] : memref<1x128xf32, #tpu.memory_space<vmem>>, vector<1x128xf32>
    tpu.vector_store %arg8[%c0_18, %34], %33 {strides = array<i32>} : memref<1x128xf32, #tpu.memory_space<vmem>>, vector<1x128xf32>,
    %c1_i32 = arith.constant 1 : i32
    return
  }
  func.func @transform_0(%arg0: i32) -> (i32, i32) {
    %c0_i32 = arith.constant 0 : i32
    %c0_i32_0 = arith.constant 0 : i32
    return %c0_i32, %arg0 : i32, i32
  }
  func.func @transform_1(%arg0: i32) -> (i32, i32) {
    %c0_i32 = arith.constant 0 : i32
    %c0_i32_0 = arith.constant 0 : i32
    %c0_i32_1 = arith.constant 0 : i32
    return %c0_i32, %c0_i32_0 : i32, i32
  }
  func.func @transform_2(%arg0: i32) -> (i32, i32) {
    %c0_i32 = arith.constant 0 : i32
    %c0_i32_0 = arith.constant 0 : i32
    %c0_i32_1 = arith.constant 0 : i32
    return %c0_i32, %c0_i32_0 : i32, i32
  }
  func.func @transform_3(%arg0: i32) -> (i32, i32) {
    %c0_i32 = arith.constant 0 : i32
    %c0_i32_0 = arith.constant 0 : i32
    %c0_i32_1 = arith.constant 0 : i32
    return %c0_i32, %c0_i32_0 : i32, i32
  }
  func.func @transform_4(%arg0: i32) -> (i32, i32) {
    %c0_i32 = arith.constant 0 : i32
    %c0_i32_0 = arith.constant 0 : i32
    %c0_i32_1 = arith.constant 0 : i32
    return %c0_i32, %c0_i32_0 : i32, i32
  }
  func.func @transform_5(%arg0: i32) -> (i32, i32) {
    %c0_i32 = arith.constant 0 : i32
    %c0_i32_0 = arith.constant 0 : i32
    %c0_i32_1 = arith.constant 0 : i32
    return %c0_i32, %c0_i32_0 : i32, i32
  }
  func.func @transform_6(%arg0: i32) -> (i32, i32) {
    %c0_i32 = arith.constant 0 : i32
    %c0_i32_0 = arith.constant 0 : i32
    %c0_i32_1 = arith.constant 0 : i32
    return %c0_i32, %c0_i32_0 : i32, i32
  }
  func.func @transform_7(%arg0: i32) -> (i32, i32) {
    %c0_i32 = arith.constant 0 : i32
    %c0_i32_0 = arith.constant 0 : i32
    return %c0_i32, %arg0 : i32, i32
  }
}

</mosaic_0001>

<bundles_post_ra>
// kernel: tpu_custom_call.1
= control target key start
LH: loop header
LB: loop body
LE: loop exit
PB: predicated region body
PF: predicated region fallthrough
CT: control target
= control target key end

     0   :  { %s437_s0 = inlined_call_operand.vmem [shape: f32[3,8], index: 0, kind: input, shape index: {}]   ;;  %s438_s1 = inlined_call_operand.vmem [shape: bf16[16,3], index: 1, kind: input, shape index: {}]   ;;  %s439_s2 = inlined_call_operand.vmem [shape: f32[16,1], index: 2, kind: input, shape index: {}]   ;;  %s440_s3 = inlined_call_operand.vmem [shape: bf16[32,16], index: 3, kind: input, shape index: {}]   ;;  %s441_s4 = inlined_call_operand.vmem [shape: f32[32,1], index: 4, kind: input, shape index: {}]   ;;  %s442_s5 = inlined_call_operand.vmem [shape: f32[32,1], index: 5, kind: input, shape index: {}]   ;;  %s443_s6 = inlined_call_operand.<no memory space> [shape: f32[1,1], index: 6, kind: input, shape index: {}]   ;;  %s444_s7 = inlined_call_operand.hbm [shape: f32[1,8], index: 7, kind: output, shape index: {}]  }
   0x1   :  { %v12_v0 = vstv %s443_s6 }
   0x2   :  { %13 = vst [vmem:[#allocation2] sm:$0x1] %v12_v0 }
   0x3   :  { %v47_v1 = vld [vmem:[%s437_s0] sm:$0x7]  ;;  %vm68_vm0 = vcmask 1040384   ;;  %vm69_vm1 = vcmask 1041408   ;;  %v333_v2 = vmov 0.0   ;;  %v334_v4 = vmov 65535  }
   0x4   :  { %283 = vmatprep.subr.bf16.mxu0 %v333_v2  ;;  %v48_v3 = vpack.c.bf16 %v47_v1, %v47_v1  ;;  %v70_v5 = vsel %vm68_vm0, 4294967295, %v334_v4  ;;  %vm335_vm2 = vmmov 0   ;;  %v32_v7 = vld [vmem:[%s439_s2] sm:$0xff]  ;;  %v336_v10 = vmov 0   ;;  %v33_v11 = vld [vmem:[%s439_s2 + $0x8] sm:$0xff] }
   0x5   :  { %v71_v6 = vsel %vm69_vm1, %v70_v5, 0  ;;  %285 = vmatprep.mubr.msk.bf16.mxu0 %vm335_vm2, %v333_v2  ;;  %v302_v9 = vld [vmem:[%s438_s1] sm:$0xff]   ;;  %300 = vset.pattern.permute.xlu0 %v336_v10  ;;  %vm64_vm3 = vcmask 23552  }
   0x6   :  { %v73_v8 = vand.u32 %v71_v6, %v48_v3  ;;  %301 = vset.pattern.permute.xlu1 %v336_v10  ;;  %51 = vperm.xlu0 %300, %v32_v7  }
   0x8   :  { %284 = vmatpush3.bf16.msra.mxu0 %v73_v8 }
   0x9   :  { %14 = vsyncpa [#allocation4], 0  ;;  %v40_v12 = vld [vmem:[%s441_s4 + $0x10] sm:$0xff]  ;;  %v42_v13 = vld [vmem:[%s442_s5] sm:$0xff]  ;;  %vm149_vm4 = vcmask 130048   ;;  %v247_v60 = vlaneseq }
   0xa   :  { %56 = vperm.xlu0 %300, %v33_v11   ;;  %v44_v14 = vld [vmem:[%s442_s5 + $0x10] sm:$0xff]  ;;  %v46_v15 = vld [vmem:[#allocation2] sm:$0x1]  ;;  %v39_v18 = vld [vmem:[%s441_s4 + $0x8] sm:$0xff] }
   0xb   :  { %286 = vmatmul.mubr.msk.bf16.vlgmr.msra.gmra.mrb[0].mxu0 %vm64_vm3, %v302_v9  ;;  %v303_v16 = vld [vmem:[%s440_s3] sm:$0xff]   ;;  %v41_v19 = vld [vmem:[%s441_s4 + $0x18] sm:$0xff]  ;;  %v43_v20 = vld [vmem:[%s442_s5 + $0x8] sm:$0xff]  ;;  %v248_v63 = vshrl.u32 %v247_v60, 7 }
   0xc   :  { %291 = vmatprep.mubr.msk.bf16.mxu1 %vm149_vm4, %v303_v16  ;;  %v38_v17 = vld [vmem:[%s441_s4] sm:$0xff]  ;;  %v45_v21 = vld [vmem:[%s442_s5 + $0x18] sm:$0xff]  ;;  %v304_v33 = vld [vmem:[%s440_s3 + $0x8] sm:$0xff]   ;;  %s337_s3 = smov [#allocation3]  }
   0xd   :  { %121 = vperm.xlu1 %301, %v38_v17   ;;  %v249_v2 = vsub.s32 0, %v248_v63  ;;  %s264_s5 = sshll.u32 %s337_s3, 4  ;;  %s265_s5 = int_to_ptr.vmem [resolvable:$true] %s264_s5 }
   0xe   :  { %131 = vperm.xlu0 %300, %v40_v12   ;;  %s309_s26 = scalar_lea.vmem %s265_s5, 16  ;;  %s313_s27 = scalar_lea.vmem %s265_s5, 32 }
   0xf   :  { %p310_p0 = scmp.ne.s32.totalorder %s265_s5, %s309_s26  ;;  %p314_p1 = scmp.lt.s32.totalorder %s265_s5, %s265_s5 }
  0x10   :  { %p315_p2 = scmp.lt.s32.totalorder %s313_s27, %s309_s26 }
  0x11   :  { %126 = vperm.xlu1 %301, %v39_v18  }
  0x12   :  { %211 = vperm.xlu0 %300, %v42_v13   ;;  %p316_p3 = por %p315_p2, %p314_p1 }
  0x14   :  { %p317_p4 = pnand %p316_p3, %p310_p0 }
  0x15   :  { %136 = vperm.xlu1 %301, %v41_v19  }
  0x16   :  { %221 = vperm.xlu0 %300, %v44_v14  }
  0x19   :  { %216 = vperm.xlu1 %301, %v43_v20  }
  0x1a   :  { %244 = vperm.xlu0 %300, %v46_v15  }
  0x1d   :  { %226 = vperm.xlu1 %301, %v45_v21  }
  0x85   :  { %v52_v22 = vpop.permute.xlu0 %51 }
  0x89   :  { %v57_v26 = vpop.permute.xlu0 %56 }
  0x8c   :  { %v122_v34 = vpop.permute.xlu1 %121 }
  0x8d   :  { %v132_v36 = vpop.permute.xlu0 %131 }
  0x90   :  { %v127_v35 = vpop.permute.xlu1 %126 }
  0x91   :  { %v212_v43 = vpop.permute.xlu0 %211 }
  0x94   :  { %v137_v37 = vpop.permute.xlu1 %136 }
  0x95   :  { %v222_v54 = vpop.permute.xlu0 %221 }
  0x98   :  { %v217_v48 = vpop.permute.xlu1 %216 }
  0x99   :  { %v245_v4 = vpop.permute.xlu0 %244 }
  0x9a   :  { %v250_v6 = vrot.slane %v245_v4, %v249_v2 }
  0x9c   :  { %v227_v57 = vpop.permute.xlu1 %226 }
  0xde   :  { %v109_v23 = vpop.f32.mrb[0].mxu0 }
  0xdf   :  { %v110_v24 = vadd.f32 %v109_v23, %v52_v22  ;;  %v287_v25 = vpop.f32.mrb[1].mxu0 }
  0xe0   :  { %v112_v27 = vpop.f32.mrb[2].mxu0 }
  0xe1   :  { %v113_v28 = vadd.f32 %v112_v27, %v57_v26  ;;  %v288_v29 = vpop.f32.mrb[3].mxu0  ;;  %v116_v30 = vmax.f32 %v110_v24, 0.0 }
  0xe3   :  { %v117_v31 = vmax.f32 %v113_v28, 0.0 }
  0xe5   :  { %v118_v32 = vpack.c.bf16 %v117_v31, %v116_v30 }
  0xe7   :  { %289 = vmatprep.subr.bf16.mxu1 %v118_v32 }
  0xe8   :  { %290 = vmatpush3.bf16.msra.mxu1 %v118_v32 }
  0xeb   :  { %292 = vmatmul.mubr.msk.bf16.vlgmr.msra.gmra.mrb[0].mxu1 %vm149_vm4, %v304_v33 }
 0x1be   :  { %v293_v38 = vpop.f32.mrb[0].mxu1 }
 0x1bf   :  { %v190_v39 = vpop.f32.mrb[1].mxu1  ;;  %v199_v40 = vadd.f32 %v293_v38, %v132_v36 }
 0x1c0   :  { %v191_v41 = vadd.f32 %v190_v39, %v122_v34  ;;  %v294_v42 = vpop.f32.mrb[2].mxu1 }
 0x1c1   :  { %v193_v44 = vpop.f32.mrb[3].mxu1  ;;  %v202_v46 = vadd.f32 %v294_v42, %v137_v37  ;;  %v207_v49 = vmax.f32 %v199_v40, 0.0 }
 0x1c2   :  { %v205_v45 = vmax.f32 %v191_v41, 0.0  ;;  %v194_v47 = vadd.f32 %v193_v44, %v127_v35 }
 0x1c3   :  { %v208_v52 = vmax.f32 %v202_v46, 0.0  ;;  %v231_v55 = vmul.f32 %v222_v54, %v207_v49 }
 0x1c4   :  { %v206_v50 = vmax.f32 %v194_v47, 0.0  ;;  %v229_v51 = vmul.f32 %v212_v43, %v205_v45 }
 0x1c5   :  { %v232_v58 = vmul.f32 %v227_v57, %v208_v52 }
 0x1c6   :  { %v230_v53 = vmul.f32 %v217_v48, %v206_v50 }
 0x1c8   :  { %v233_v56 = vadd.f32 %v230_v53, %v229_v51 }
 0x1ca   :  { %v234_v59 = vadd.f32 %v233_v56, %v231_v55 }
 0x1cc   :  { %v235_v61 = vadd.f32 %v234_v59, %v232_v58 }
 0x1ce   :  { %v236_v62 = vrot.slane %v235_v61, 4 }
 0x1d0   :  { %v237_v0 = vadd.f32 %v236_v62, %v235_v61 }
 0x1d2   :  { %v238_v1 = vrot.slane %v237_v0, 2 }
 0x1d4   :  { %v239_v3 = vadd.f32 %v238_v1, %v237_v0 }
 0x1d6   :  { %v240_v5 = vrot.slane %v239_v3, 1 }
 0x1d8   :  { %v241_v7 = vadd.f32 %v240_v5, %v239_v3 }
 0x1da   :  { %v251_v8 = vadd.f32 %v250_v6, %v241_v7 }
 0x1dc   :  { %v252_v9 = vsub.f32 0.0, %v251_v8 }
 0x1de   :  { %v253_v10 = vmul.f32 1.442695, %v252_v9 }
 0x1e0   :  { %305 = vpow2.f32 %v253_v10 }
 0x1ea   :  { %v306_v11 = vpop.eup %305 }
 0x1eb   :  { %v255_v12 = vadd.f32 1.0, %v306_v11 }
 0x1ed   :  { %307 = vrcp.f32 %v255_v12 }
 0x1f7   :  { %v308_v13 = vpop.eup %307 }
 0x1f8   :  { %257 = vst [vmem:[#allocation3] sm:$0x1] %v308_v13 }
 0x1f9   :  { %320 = shalt.err (!%p317_p4)
}
 0x1fa   :  { %s321_s6 = scalar_lea.hbm %s444_s7, 16 }
 0x1fb   :  { %p322_p5 = scmp.ne.s32.totalorder %s444_s7, %s321_s6  ;;  %p325_p6 = scmp.lt.u32.totalorder %s321_s6, %s444_s7 }
 0x1fd   :  { %p327_p7 = pnand %p325_p6, %p322_p5 }
 0x1ff   :  { %330 = shalt.err (!%p327_p7)
}
 0x200   :  { %267 = dma.vmem_to_hbm [thread:$0]  %s265_s5, 16, %s444_s7, [#allocation4]  }
 0x201   :  { %331 = dma.done.wait [#allocation4], 16  }
 0x202   :  { %332 = vsyncadd [#allocation4], 4294967280 }
 0x203   :  { %271 = vsyncpa [#allocation4], 1 }

</bundles_post_ra>
